<compile_context>
chip_gen: v7x
topology: tpu7x:2x2x1
jax: 0.10.0
libtpu: 0.0.40
codegen_flags: <defaults>
</compile_context>

<pallas_src>
import functools

import jax
import jax.numpy as jnp
from jax import lax
from jax.experimental import pallas as pl
from jax.experimental.pallas import tpu as pltpu


def _round_up(x, m):
    return (x + m - 1) // m * m


def _cdiv(a, b):
    return -(-a // b)


def _vmem_cap_bytes():
    """~0.75x of physical VMEM (64 MiB on v7x, 128 MiB on v5e/v6e)."""
    try:
        return int(0.75 * pltpu.get_tpu_info().vmem_capacity_bytes)
    except Exception:
        return 48 * 1024 * 1024


def _pick_row_tiling(M, tm_pref):
    """Row tile / block count; keeps the block count even (v7x megacore)
    whenever the per-core blocks stay >= 512 rows."""
    m8 = _round_up(max(int(M), 1), 8)
    tm = _round_up(max(8, min(int(tm_pref), m8)), 8)
    mb = _cdiv(m8, tm)
    if mb == 1 and m8 >= 2 * 512:
        mb = 2                                    # split across both TCs
    elif mb > 1 and mb % 2 == 1 and _round_up(_cdiv(m8, mb + 1), 8) >= 512:
        mb += 1
    tm = _round_up(_cdiv(m8, mb), 8)
    return tm, mb


# -----------------------------------------------------------------------------
# norm_space preparation (cacheable across eval calls — the entity embedding
# table is fixed): cast to compute dtype, transpose to (D, E), pad E to a
# multiple of the entity tile.
# -----------------------------------------------------------------------------
def prepare_norm_space(norm_space, *, te=512, compute_dtype=jnp.bfloat16):
    E, D = norm_space.shape
    te = max(128, min(_round_up(te, 128), _round_up(E, 128)))
    e_pad = _round_up(E, te)
    ns_t = jnp.pad(norm_space.astype(compute_dtype).T,
                   ((0, 0), (0, e_pad - E)))
    return dict(ns_t=ns_t, E=E, D=D, te=te, e_pad=e_pad, dtype=compute_dtype)


# -----------------------------------------------------------------------------
# Kernel 1: entity-linking scores + online argmax over the entity space, with
# the t2 masked tp/fp/fn counts computed in the epilogue of the last entity
# block.  Grid = (row blocks [parallel], entity blocks [arbitrary]).
#   scores = ent_tile @ ns_tile                  (MXU, bf16 -> f32 acc)
#   pred   = argmax_E(scores)                    (first occurrence, as torch)
#   tp     = sum over (pred != null) & mask of (pred == gt)
#   fp     = sum over (pred != null) & mask of (pred != gt)
#   fn     = sum over (pred == null) & mask of (pred != gt)
# Counts per row block are written lane-dense into a (1, 128) int32 slab.
# -----------------------------------------------------------------------------
def el_count_kernel(ent_ref, ns_ref, gt_ref, mask_ref, cnt_ref,
                    max_sc, arg_sc, *, e_valid, null_idx, mask_cols):
    e = pl.program_id(1)
    te = ns_ref.shape[1]

    @pl.when(e == 0)
    def _():
        max_sc[...] = jnp.full(max_sc.shape, -jnp.inf, max_sc.dtype)
        arg_sc[...] = jnp.zeros(arg_sc.shape, arg_sc.dtype)

    # (tm, D) @ (D, te) -> (tm, te) on the MXU, f32 accumulation.  norm_space
    # was pre-transposed in HBM, so no per-step transpose of the entity tile.
    s = lax.dot_general(ent_ref[...], ns_ref[...],
                        dimension_numbers=(((1,), (0,)), ((), ())),
                        preferred_element_type=jnp.float32)

    # Block-local column indices (0..te-1).  The global offset e*te is added
    # only to the (tm, 1) winner, not to the full (tm, te) tile.
    lcol = lax.broadcasted_iota(jnp.int32, s.shape, 1)
    if mask_cols:
        # Static: only emitted when the entity space was padded.  The
        # predicate is always true except on the last entity block, where it
        # kills the zero-padded columns so they can never win the argmax.
        s = jnp.where(lcol < (e_valid - e * te), s, -jnp.inf)

    # Block-local argmax (first max index, matching torch/jnp argmax).
    lmax = jnp.max(s, axis=-1, keepdims=True)                       # (tm, 1)
    big = jnp.iinfo(jnp.int32).max
    larg = jnp.min(jnp.where(s == lmax, lcol, big), axis=-1,
                   keepdims=True) + e * te                          # (tm, 1)

    upd = lmax > max_sc[...]      # strict > keeps the earlier block on ties
    arg_sc[...] = jnp.where(upd, larg, arg_sc[...])
    max_sc[...] = jnp.where(upd, lmax, max_sc[...])

    @pl.when(e == pl.num_programs(1) - 1)
    def _():
        pred = arg_sc[...]                     # (tm, 1) int32
        gt = gt_ref[...]                       # (tm, 1) int32
        m = mask_ref[...] != 0
        pm = (pred != null_idx) & m
        nm = (pred == null_idx) & m
        eq = pred == gt                        # == y2[m, pred[m]] for one-hot y2
        tp = jnp.sum((pm & eq).astype(jnp.int32), keepdims=True)    # (1, 1)
        fp = jnp.sum((pm & (~eq)).astype(jnp.int32), keepdims=True)
        fn = jnp.sum((nm & (~eq)).astype(jnp.int32), keepdims=True)
        lane = lax.broadcasted_iota(jnp.int32, cnt_ref.shape, 1)    # (1, 128)
        cnt_ref[...] = (jnp.where(lane == 0, tp, 0)
                        + jnp.where(lane == 1, fp, 0)
                        + jnp.where(lane == 2, fn, 0))


def entity_link_counts(ent, ns_prep, gt2, mask, *, null_idx=None, tm=1024):
    """t2 tp/fp/fn for argmax_E(ent @ norm_space.T) vs integer labels gt2."""
    M, D = ent.shape
    assert D == ns_prep['D'], "ent / norm_space feature dims differ"
    E, te, e_pad = ns_prep['E'], ns_prep['te'], ns_prep['e_pad']
    dt = ns_prep['dtype']
    if null_idx is None:
        null_idx = E - 1                      # NIL entity = last row (as torch code)
    eb = e_pad // te

    tm, mb = _pick_row_tiling(M, tm)
    m_pad = tm * mb

    # bf16 operands -> half the HBM/VMEM bytes, MXU peak throughput.
    ent_p = jnp.pad(ent.astype(dt), ((0, m_pad - M), (0, 0)))
    gt_p = jnp.pad(gt2.astype(jnp.int32).reshape(M, 1),
                   ((0, m_pad - M), (0, 0)))
    mk_p = jnp.pad(mask.astype(jnp.int32).reshape(M, 1),
                   ((0, m_pad - M), (0, 0)))

    kern = functools.partial(el_count_kernel, e_valid=E, null_idx=null_idx,
                             mask_cols=(e_pad != E))

    # VMEM budget: double-buffered input blocks, f32 score tile, lane-padded
    # (tm, 1) side inputs and scratch, count slab.  Capped below physical VMEM
    # (important on v7x where physical == 64 MiB).
    bpe = jnp.dtype(dt).itemsize
    d_lane = _round_up(D, 128)                 # lane padding of the ent block
    d_sub = _round_up(D, 8 * (4 // bpe))       # sublane padding of the ns block
    est = (2 * tm * d_lane * bpe               # ent blocks (double buffered)
           + 2 * d_sub * te * bpe              # norm_space.T blocks
           + 2 * 2 * tm * 128 * 4              # gt + mask blocks (lane padded)
           + tm * te * 4                       # f32 score tile
           + 2 * tm * 128 * 4                  # max/arg scratch (lane padded)
           + 2 * 2 * 128 * 4)                  # count slab
    vmem_limit = int(min(_vmem_cap_bytes(),
                         max(32 * 1024 * 1024, 2 * est)))

    cnt = pl.pallas_call(
        kern,
        out_shape=jax.ShapeDtypeStruct((1, mb * 128), jnp.int32),
        grid_spec=pltpu.PrefetchScalarGridSpec(
            num_scalar_prefetch=0,
            grid=(mb, eb),                     # reduction (entity) axis last
            in_specs=[pl.BlockSpec((tm, D), lambda i, e: (i, 0)),
                      pl.BlockSpec((D, te), lambda i, e: (0, e)),
                      pl.BlockSpec((tm, 1), lambda i, e: (i, 0)),
                      pl.BlockSpec((tm, 1), lambda i, e: (i, 0))],
            out_specs=pl.BlockSpec((1, 128), lambda i, e: (0, i)),
            scratch_shapes=[pltpu.VMEM((tm, 1), jnp.float32),
                            pltpu.VMEM((tm, 1), jnp.int32)]),
        compiler_params=pltpu.CompilerParams(
            dimension_semantics=("parallel", "arbitrary"),
            vmem_limit_bytes=vmem_limit),
    )(ent_p, ns_prep['ns_t'], gt_p, mk_p)

    c = cnt.reshape(mb, 128)[:, :3].sum(axis=0)
    return {'tp': c[0], 'fp': c[1], 'fn': c[2]}


# -----------------------------------------------------------------------------
# Kernel 2: fused masked tp/fp/fn counts for t0 and t1 in ONE launch.
# Inputs are sublane+lane dense (M_pad/128, 128) int32 arrays; output is a
# lane-dense (1, 128) int32 slab: [tp0, fp0, fn0, tp1, fp1, fn1, 0, ...].
# -----------------------------------------------------------------------------
def t01_count_kernel(p0_ref, g0_ref, p1_ref, g1_ref, m_ref, cnt_ref,
                     *, null0, null1):
    valid = m_ref[...] != 0        # padded positions carry mask == 0

    def three(pred, gt, null_idx):
        pm = (pred != null_idx) & valid
        gm = (gt != null_idx) & valid
        eq = pred == gt
        return (jnp.sum((pm & eq).astype(jnp.int32), keepdims=True),
                jnp.sum((pm & (~eq)).astype(jnp.int32), keepdims=True),
                jnp.sum((gm & (~eq)).astype(jnp.int32), keepdims=True))

    c0 = three(p0_ref[...], g0_ref[...], null0)
    c1 = three(p1_ref[...], g1_ref[...], null1)

    lane = lax.broadcasted_iota(jnp.int32, cnt_ref.shape, 1)
    acc = jnp.zeros(cnt_ref.shape, jnp.int32)
    for idx, v in enumerate(c0 + c1):
        acc = acc + jnp.where(lane == idx, v, 0)
    cnt_ref[...] = acc


def t01_counts(p0, g0, p1, g1, mask, *, null0, null1):
    M = p0.shape[0]
    m_pad = _round_up(M, 128)
    rows = m_pad // 128

    def prep(x):
        x = jnp.pad(x.astype(jnp.int32).reshape(M), (0, m_pad - M))
        return x.reshape(rows, 128)            # sublane + lane dense layout

    kern = functools.partial(t01_count_kernel, null0=null0, null1=null1)
    cnt = pl.pallas_call(
        kern,
        out_shape=jax.ShapeDtypeStruct((1, 128), jnp.int32),
        grid=(1,),
        in_specs=[pl.BlockSpec((rows, 128), lambda i: (0, 0))] * 5,
        out_specs=pl.BlockSpec((1, 128), lambda i: (0, 0)),
    )(prep(p0), prep(g0), prep(p1), prep(g1), prep(mask))
    return ({'tp': cnt[0, 0], 'fp': cnt[0, 1], 'fn': cnt[0, 2]},
            {'tp': cnt[0, 3], 'fp': cnt[0, 4], 'fn': cnt[0, 5]})


# -----------------------------------------------------------------------------
# JointMDEL.eval_retrieval_performance (mention_level=False branch).
#   y2 may be integer entity labels (B, S) [preferred — avoids an (M, E)
#   one-hot argmax in XLA] or a strict one-hot (B, S, E).
#   norm_space may be passed raw, or pre-processed once with
#   prepare_norm_space() and reused across calls (it is a fixed table).
# -----------------------------------------------------------------------------
def eval_retrieval_performance(t0, t1, t2, norm_space=None, *,
                               prepared_norm_space=None,
                               tm=1024, te=512,
                               compute_dtype=jnp.bfloat16):
    pred0, y0, masks = t0          # (B,S) int, (B,S,3) one-hot, (B,S) bool
    out1, y1, _ = t1               # (B,S,T) logits, (B,S,T) one-hot
    ent_out, y2, _ = t2            # (B,S,D), (B,S) int or (B,S,E) one-hot

    B, S = masks.shape
    M = B * S
    mask_flat = masks.reshape(M)

    # t0/t1: tiny class dims -> label/logit argmax is glue; counts in ONE
    # fused sublane+lane-dense Pallas launch.
    p0 = pred0.reshape(M)
    g0 = jnp.argmax(y0, axis=-1).reshape(M)
    p1 = (jnp.argmax(out1, axis=-1) if out1.ndim == 3 else out1).reshape(M)
    g1 = jnp.argmax(y1, axis=-1).reshape(M)
    t0_out, t1_out = t01_counts(p0, g0, p1, g1, mask_flat,
                                null0=1, null1=y1.shape[-1] - 1)

    # t2: entity linking hot path.  The dense one-hot y2 never enters the
    # kernel (integer labels preferred; one-hot needs one glue argmax).
    D = ent_out.shape[-1]
    if prepared_norm_space is None:
        prepared_norm_space = prepare_norm_space(norm_space, te=te,
                                                 compute_dtype=compute_dtype)
    E = prepared_norm_space['E']
    g2 = (jnp.argmax(y2, axis=-1) if y2.ndim == 3 else y2).reshape(M)
    t2_out = entity_link_counts(ent_out.reshape(M, D), prepared_norm_space,
                                g2, mask_flat, null_idx=E - 1, tm=tm)

    return {'t0': t0_out, 't1': t1_out, 't2': t2_out}


# -----------------------------------------------------------------------------
# Pure-JAX reference mirroring the PyTorch code (incl. the one-hot gather),
# with the score matmul on bf16-rounded operands to match the kernel's dtype.
# -----------------------------------------------------------------------------
def reference(t0, t1, t2, norm_space, compute_dtype=jnp.bfloat16):
    def cnt(pred, gt, masks, null_idx):
        pm = (pred != null_idx) & masks
        gm = (gt != null_idx) & masks
        return {'tp': int(jnp.sum(pm & (pred == gt))),
                'fp': int(jnp.sum(pm & (pred != gt))),
                'fn': int(jnp.sum(gm & (gt != pred)))}

    pred0, y0, masks = t0
    out1, y1, _ = t1
    ent_out, y2, _ = t2
    res = {}
    res['t0'] = cnt(pred0, jnp.argmax(y0, -1), masks, 1)
    res['t1'] = cnt(jnp.argmax(out1, -1), jnp.argmax(y1, -1), masks,
                    y1.shape[-1] - 1)

    ent = ent_out.astype(compute_dtype).astype(jnp.float32)
    ns = norm_space.astype(compute_dtype).astype(jnp.float32)
    scores = jnp.einsum('bsd,ed->bse', ent, ns)
    pred2 = jnp.argmax(scores, -1)
    gt2 = jnp.argmax(y2, -1)
    E = norm_space.shape[0]
    pm = (pred2 != E - 1) & masks
    nm = (pred2 == E - 1) & masks
    gathered = jnp.take_along_axis(y2, pred2[..., None], axis=-1)[..., 0]
    res['t2'] = {'tp': int(jnp.sum(jnp.where(pm, gathered, 0.0))),
                 'fp': int(jnp.sum(pm & (gathered == 0.0))),
                 'fn': int(jnp.sum(nm & (pred2 != gt2)))}
    return res


if __name__ == "__main__":
    B, S, D, E, T = 2, 8, 32, 200, 8   # E=200 exercises padded-entity masking
    key = jax.random.PRNGKey(0)
    k = jax.random.split(key, 8)

    # Synthetic inputs / "parameters" (norm_space = entity name embedding
    # table produced by the name encoder of the original model).
    ent_out = jax.random.normal(k[0], (B, S, D), jnp.float32)
    norm_space = jax.random.normal(k[1], (E, D), jnp.float32)

    pred0 = jax.random.randint(k[2], (B, S), 0, 3, jnp.int32)          # IOB preds
    y0 = jax.nn.one_hot(jax.random.randint(k[3], (B, S), 0, 3), 3)     # IOB labels
    out1 = jax.random.normal(k[4], (B, S, T), jnp.float32)             # type logits
    y1 = jax.nn.one_hot(jax.random.randint(k[5], (B, S), 0, T), T)     # type labels
    g2_int = jax.random.randint(k[6], (B, S), 0, E, jnp.int32)         # entity labels
    y2 = jax.nn.one_hot(g2_int, E)                                     # strict one-hot
    masks = jnp.arange(S)[None, :] < jnp.array([[S], [S - 2]])         # (B, S) bool

    t0 = (pred0, y0, masks)
    t1 = (out1, y1, masks)

    ref = reference(t0, t1, (ent_out, y2, masks), norm_space)

    # Config A: defaults (auto-clipped tiles), one-hot labels, raw norm_space.
    out_a = jax.block_until_ready(
        eval_retrieval_performance(t0, t1, (ent_out, y2, masks), norm_space))

    # Config B: explicit small tiles (exercises M tiling, E tiling and the
    # padded-column mask), integer labels, and a pre-prepared / cached
    # norm_space table.
    ns_prep = prepare_norm_space(norm_space, te=128)
    out_b = jax.block_until_ready(
        eval_retrieval_performance(t0, t1, (ent_out, g2_int, masks),
                                   prepared_norm_space=ns_prep, tm=8))

    for name, out in (("A", out_a), ("B", out_b)):
        for task in ('t0', 't1', 't2'):
            for key_ in ('tp', 'fp', 'fn'):
                got = int(out[task][key_])
                want = ref[task][key_]
                assert got == want, \
                    f"cfg={name} {task}/{key_}: pallas={got} ref={want}"

    print("KERNEL_OK")
</pallas_src>

<mosaic_0001>
module attributes {stable_mosaic.version = 11 : i64} {
  func.func @t01_count_kernel(%arg0: i32, %arg1: memref<1x128xi32, #tpu.memory_space<vmem>>, %arg2: memref<1x128xi32, #tpu.memory_space<vmem>>, %arg3: memref<1x128xi32, #tpu.memory_space<vmem>>, %arg4: memref<1x128xi32, #tpu.memory_space<vmem>>, %arg5: memref<1x128xi32, #tpu.memory_space<vmem>>, %arg6: memref<1x128xi32, #tpu.memory_space<vmem>>) attributes {dimension_semantics = [#tpu.dimension_semantics<arbitrary>], iteration_bounds = array<i64: 1>, scalar_prefetch = 0 : i64, scratch_operands = 0 : i64, tpu.core_type = #tpu.core_type<tc>, window_params = [{pipeline_mode = #tpu.pipeline_mode<synchronous>, transform_indices = @transform_0, window_bounds = array<i64: 1, 128>}, {pipeline_mode = #tpu.pipeline_mode<synchronous>, transform_indices = @transform_1, window_bounds = array<i64: 1, 128>}, {pipeline_mode = #tpu.pipeline_mode<synchronous>, transform_indices = @transform_2, window_bounds = array<i64: 1, 128>}, {pipeline_mode = #tpu.pipeline_mode<synchronous>, transform_indices = @transform_3, window_bounds = array<i64: 1, 128>}, {pipeline_mode = #tpu.pipeline_mode<synchronous>, transform_indices = @transform_4, window_bounds = array<i64: 1, 128>}, {pipeline_mode = #tpu.pipeline_mode<synchronous>, transform_indices = @transform_5, window_bounds = array<i64: 1, 128>}]} {
    %c0 = arith.constant 0 : index
    %c0_0 = arith.constant 0 : index
    %0 = vector.load %arg5[%c0, %c0_0] : memref<1x128xi32, #tpu.memory_space<vmem>>, vector<1x128xi32>
    %c0_i32 = arith.constant 0 : i32
    %1 = vector.broadcast %c0_i32 : i32 to vector<1x128xi32>
    %2 = arith.cmpi ne, %0, %1 : vector<1x128xi32>
    %c0_1 = arith.constant 0 : index
    %c0_2 = arith.constant 0 : index
    %3 = vector.load %arg1[%c0_1, %c0_2] : memref<1x128xi32, #tpu.memory_space<vmem>>, vector<1x128xi32>
    %c0_3 = arith.constant 0 : index
    %c0_4 = arith.constant 0 : index
    %4 = vector.load %arg2[%c0_3, %c0_4] : memref<1x128xi32, #tpu.memory_space<vmem>>, vector<1x128xi32>
    %c1_i32 = arith.constant 1 : i32
    %5 = vector.broadcast %c1_i32 : i32 to vector<1x128xi32>
    %6 = arith.cmpi ne, %3, %5 : vector<1x128xi32>
    %7 = arith.andi %6, %2 : vector<1x128xi1>
    %c1_i32_5 = arith.constant 1 : i32
    %8 = vector.broadcast %c1_i32_5 : i32 to vector<1x128xi32>
    %9 = arith.cmpi ne, %4, %8 : vector<1x128xi32>
    %10 = arith.andi %9, %2 : vector<1x128xi1>
    %11 = arith.cmpi eq, %3, %4 : vector<1x128xi32>
    %12 = arith.andi %7, %11 : vector<1x128xi1>
    %13 = arith.extui %12 : vector<1x128xi1> to vector<1x128xi32>
    %14 = vector.shape_cast %13 : vector<1x128xi32> to vector<1x1x128xi32>
    %cst = arith.constant dense<0> : vector<1xi32>
    %15 = vector.multi_reduction <add>, %14, %cst [1, 2] : vector<1x1x128xi32> to vector<1xi32>
    %16 = vector.shape_cast %15 : vector<1xi32> to vector<1x1x1xi32>
    %17 = vector.extract %16[0, 0, 0] : i32 from vector<1x1x1xi32>
    %18 = vector.broadcast %17 : i32 to vector<1x1xi32>
    %cst_6 = arith.constant dense<true> : vector<1x128xi1>
    %19 = arith.xori %11, %cst_6 : vector<1x128xi1>
    %20 = arith.andi %7, %19 : vector<1x128xi1>
    %21 = arith.extui %20 : vector<1x128xi1> to vector<1x128xi32>
    %22 = vector.shape_cast %21 : vector<1x128xi32> to vector<1x1x128xi32>
    %cst_7 = arith.constant dense<0> : vector<1xi32>
    %23 = vector.multi_reduction <add>, %22, %cst_7 [1, 2] : vector<1x1x128xi32> to vector<1xi32>
    %24 = vector.shape_cast %23 : vector<1xi32> to vector<1x1x1xi32>
    %25 = vector.extract %24[0, 0, 0] : i32 from vector<1x1x1xi32>
    %26 = vector.broadcast %25 : i32 to vector<1x1xi32>
    %cst_8 = arith.constant dense<true> : vector<1x128xi1>
    %27 = arith.xori %11, %cst_8 : vector<1x128xi1>
    %28 = arith.andi %10, %27 : vector<1x128xi1>
    %29 = arith.extui %28 : vector<1x128xi1> to vector<1x128xi32>
    %30 = vector.shape_cast %29 : vector<1x128xi32> to vector<1x1x128xi32>
    %cst_9 = arith.constant dense<0> : vector<1xi32>
    %31 = vector.multi_reduction <add>, %30, %cst_9 [1, 2] : vector<1x1x128xi32> to vector<1xi32>
    %32 = vector.shape_cast %31 : vector<1xi32> to vector<1x1x1xi32>
    %33 = vector.extract %32[0, 0, 0] : i32 from vector<1x1x1xi32>
    %34 = vector.broadcast %33 : i32 to vector<1x1xi32>
    %c0_10 = arith.constant 0 : index
    %c0_11 = arith.constant 0 : index
    %35 = vector.load %arg3[%c0_10, %c0_11] : memref<1x128xi32, #tpu.memory_space<vmem>>, vector<1x128xi32>
    %c0_12 = arith.constant 0 : index
    %c0_13 = arith.constant 0 : index
    %36 = vector.load %arg4[%c0_12, %c0_13] : memref<1x128xi32, #tpu.memory_space<vmem>>, vector<1x128xi32>
    %c7_i32 = arith.constant 7 : i32
    %37 = vector.broadcast %c7_i32 : i32 to vector<1x128xi32>
    %38 = arith.cmpi ne, %35, %37 : vector<1x128xi32>
    %39 = arith.andi %38, %2 : vector<1x128xi1>
    %c7_i32_14 = arith.constant 7 : i32
    %40 = vector.broadcast %c7_i32_14 : i32 to vector<1x128xi32>
    %41 = arith.cmpi ne, %36, %40 : vector<1x128xi32>
    %42 = arith.andi %41, %2 : vector<1x128xi1>
    %43 = arith.cmpi eq, %35, %36 : vector<1x128xi32>
    %44 = arith.andi %39, %43 : vector<1x128xi1>
    %45 = arith.extui %44 : vector<1x128xi1> to vector<1x128xi32>
    %46 = vector.shape_cast %45 : vector<1x128xi32> to vector<1x1x128xi32>
    %cst_15 = arith.constant dense<0> : vector<1xi32>
    %47 = vector.multi_reduction <add>, %46, %cst_15 [1, 2] : vector<1x1x128xi32> to vector<1xi32>
    %48 = vector.shape_cast %47 : vector<1xi32> to vector<1x1x1xi32>
    %49 = vector.extract %48[0, 0, 0] : i32 from vector<1x1x1xi32>
    %50 = vector.broadcast %49 : i32 to vector<1x1xi32>
    %cst_16 = arith.constant dense<true> : vector<1x128xi1>
    %51 = arith.xori %43, %cst_16 : vector<1x128xi1>
    %52 = arith.andi %39, %51 : vector<1x128xi1>
    %53 = arith.extui %52 : vector<1x128xi1> to vector<1x128xi32>
    %54 = vector.shape_cast %53 : vector<1x128xi32> to vector<1x1x128xi32>
    %cst_17 = arith.constant dense<0> : vector<1xi32>
    %55 = vector.multi_reduction <add>, %54, %cst_17 [1, 2] : vector<1x1x128xi32> to vector<1xi32>
    %56 = vector.shape_cast %55 : vector<1xi32> to vector<1x1x1xi32>
    %57 = vector.extract %56[0, 0, 0] : i32 from vector<1x1x1xi32>
    %58 = vector.broadcast %57 : i32 to vector<1x1xi32>
    %cst_18 = arith.constant dense<true> : vector<1x128xi1>
    %59 = arith.xori %43, %cst_18 : vector<1x128xi1>
    %60 = arith.andi %42, %59 : vector<1x128xi1>
    %61 = arith.extui %60 : vector<1x128xi1> to vector<1x128xi32>
    %62 = vector.shape_cast %61 : vector<1x128xi32> to vector<1x1x128xi32>
    %cst_19 = arith.constant dense<0> : vector<1xi32>
    %63 = vector.multi_reduction <add>, %62, %cst_19 [1, 2] : vector<1x1x128xi32> to vector<1xi32>
    %64 = vector.shape_cast %63 : vector<1xi32> to vector<1x1x1xi32>
    %65 = vector.extract %64[0, 0, 0] : i32 from vector<1x1x1xi32>
    %66 = vector.broadcast %65 : i32 to vector<1x1xi32>
    %67 = tpu.iota {dimensions = array<i32: 1>} : vector<1x128xi32>
    %c0_i32_20 = arith.constant 0 : i32
    %68 = vector.broadcast %c0_i32_20 : i32 to vector<1x128xi32>
    %c0_i32_21 = arith.constant 0 : i32
    %69 = vector.broadcast %c0_i32_21 : i32 to vector<1x128xi32>
    %70 = arith.cmpi eq, %67, %69 : vector<1x128xi32>
    %c0_i32_22 = arith.constant 0 : i32
    %71 = vector.shape_cast %18 : vector<1x1xi32> to vector<1x1xi32>
    %72 = vector.broadcast %71 : vector<1x1xi32> to vector<1x128xi32>
    %73 = vector.broadcast %c0_i32_22 : i32 to vector<1x128xi32>
    %74 = arith.select %70, %72, %73 : vector<1x128xi1>, vector<1x128xi32>
    %75 = arith.addi %68, %74 : vector<1x128xi32>
    %c1_i32_23 = arith.constant 1 : i32
    %76 = vector.broadcast %c1_i32_23 : i32 to vector<1x128xi32>
    %77 = arith.cmpi eq, %67, %76 : vector<1x128xi32>
    %c0_i32_24 = arith.constant 0 : i32
    %78 = vector.shape_cast %26 : vector<1x1xi32> to vector<1x1xi32>
    %79 = vector.broadcast %78 : vector<1x1xi32> to vector<1x128xi32>
    %80 = vector.broadcast %c0_i32_24 : i32 to vector<1x128xi32>
    %81 = arith.select %77, %79, %80 : vector<1x128xi1>, vector<1x128xi32>
    %82 = arith.addi %75, %81 : vector<1x128xi32>
    %c2_i32 = arith.constant 2 : i32
    %83 = vector.broadcast %c2_i32 : i32 to vector<1x128xi32>
    %84 = arith.cmpi eq, %67, %83 : vector<1x128xi32>
    %c0_i32_25 = arith.constant 0 : i32
    %85 = vector.shape_cast %34 : vector<1x1xi32> to vector<1x1xi32>
    %86 = vector.broadcast %85 : vector<1x1xi32> to vector<1x128xi32>
    %87 = vector.broadcast %c0_i32_25 : i32 to vector<1x128xi32>
    %88 = arith.select %84, %86, %87 : vector<1x128xi1>, vector<1x128xi32>
    %89 = arith.addi %82, %88 : vector<1x128xi32>
    %c3_i32 = arith.constant 3 : i32
    %90 = vector.broadcast %c3_i32 : i32 to vector<1x128xi32>
    %91 = arith.cmpi eq, %67, %90 : vector<1x128xi32>
    %c0_i32_26 = arith.constant 0 : i32
    %92 = vector.shape_cast %50 : vector<1x1xi32> to vector<1x1xi32>
    %93 = vector.broadcast %92 : vector<1x1xi32> to vector<1x128xi32>
    %94 = vector.broadcast %c0_i32_26 : i32 to vector<1x128xi32>
    %95 = arith.select %91, %93, %94 : vector<1x128xi1>, vector<1x128xi32>
    %96 = arith.addi %89, %95 : vector<1x128xi32>
    %c4_i32 = arith.constant 4 : i32
    %97 = vector.broadcast %c4_i32 : i32 to vector<1x128xi32>
    %98 = arith.cmpi eq, %67, %97 : vector<1x128xi32>
    %c0_i32_27 = arith.constant 0 : i32
    %99 = vector.shape_cast %58 : vector<1x1xi32> to vector<1x1xi32>
    %100 = vector.broadcast %99 : vector<1x1xi32> to vector<1x128xi32>
    %101 = vector.broadcast %c0_i32_27 : i32 to vector<1x128xi32>
    %102 = arith.select %98, %100, %101 : vector<1x128xi1>, vector<1x128xi32>
    %103 = arith.addi %96, %102 : vector<1x128xi32>
    %c5_i32 = arith.constant 5 : i32
    %104 = vector.broadcast %c5_i32 : i32 to vector<1x128xi32>
    %105 = arith.cmpi eq, %67, %104 : vector<1x128xi32>
    %c0_i32_28 = arith.constant 0 : i32
    %106 = vector.shape_cast %66 : vector<1x1xi32> to vector<1x1xi32>
    %107 = vector.broadcast %106 : vector<1x1xi32> to vector<1x128xi32>
    %108 = vector.broadcast %c0_i32_28 : i32 to vector<1x128xi32>
    %109 = arith.select %105, %107, %108 : vector<1x128xi1>, vector<1x128xi32>
    %110 = arith.addi %103, %109 : vector<1x128xi32>
    %c0_29 = arith.constant 0 : index
    %c0_30 = arith.constant 0 : index
    %111 = vector.load %arg6[%c0_29, %c0_30] : memref<1x128xi32, #tpu.memory_space<vmem>>, vector<1x128xi32>
    tpu.vector_store %arg6[%c0_29, %c0_30], %110 {strides = array<i32>} : memref<1x128xi32, #tpu.memory_space<vmem>>, vector<1x128xi32>,
    return
  }
  func.func @transform_0(%arg0: i32) -> (i32, i32) {
    %c0_i32 = arith.constant 0 : i32
    %c0_i32_0 = arith.constant 0 : i32
    %c0_i32_1 = arith.constant 0 : i32
    return %c0_i32, %c0_i32_0 : i32, i32
  }
  func.func @transform_1(%arg0: i32) -> (i32, i32) {
    %c0_i32 = arith.constant 0 : i32
    %c0_i32_0 = arith.constant 0 : i32
    %c0_i32_1 = arith.constant 0 : i32
    return %c0_i32, %c0_i32_0 : i32, i32
  }
  func.func @transform_2(%arg0: i32) -> (i32, i32) {
    %c0_i32 = arith.constant 0 : i32
    %c0_i32_0 = arith.constant 0 : i32
    %c0_i32_1 = arith.constant 0 : i32
    return %c0_i32, %c0_i32_0 : i32, i32
  }
  func.func @transform_3(%arg0: i32) -> (i32, i32) {
    %c0_i32 = arith.constant 0 : i32
    %c0_i32_0 = arith.constant 0 : i32
    %c0_i32_1 = arith.constant 0 : i32
    return %c0_i32, %c0_i32_0 : i32, i32
  }
  func.func @transform_4(%arg0: i32) -> (i32, i32) {
    %c0_i32 = arith.constant 0 : i32
    %c0_i32_0 = arith.constant 0 : i32
    %c0_i32_1 = arith.constant 0 : i32
    return %c0_i32, %c0_i32_0 : i32, i32
  }
  func.func @transform_5(%arg0: i32) -> (i32, i32) {
    %c0_i32 = arith.constant 0 : i32
    %c0_i32_0 = arith.constant 0 : i32
    %c0_i32_1 = arith.constant 0 : i32
    return %c0_i32, %c0_i32_0 : i32, i32
  }
}

</mosaic_0001>

<bundles_post_ra>
// kernel: tpu_custom_call.1
= control target key start
LH: loop header
LB: loop body
LE: loop exit
PB: predicated region body
PF: predicated region fallthrough
CT: control target
= control target key end

     0   :  { %10 = vsyncpa [#allocation3], 0  ;;  %s405_s0 = inlined_call_operand.hbm [shape: s32[1,128], index: 0, kind: input, shape index: {}]   ;;  %s406_s1 = inlined_call_operand.vmem [shape: s32[1,128], index: 1, kind: input, shape index: {}]   ;;  %s407_s2 = inlined_call_operand.vmem [shape: s32[1,128], index: 2, kind: input, shape index: {}]   ;;  %s408_s3 = inlined_call_operand.vmem [shape: s32[1,128], index: 3, kind: input, shape index: {}]   ;;  %s409_s4 = inlined_call_operand.vmem [shape: s32[1,128], index: 4, kind: input, shape index: {}]   ;;  %s410_s5 = inlined_call_operand.hbm [shape: s32[1,128], index: 5, kind: output, shape index: {}]  }
   0x1   :  { %11 = vsyncpa [#allocation4], 0  ;;  %s289_s18 = smov [#allocation2]   ;;  %s241_s22 = scalar_lea.hbm %s405_s0, 16 }
   0x2   :  { %s18_s19 = sshll.u32 %s289_s18, 4  ;;  %p242_p0 = scmp.ne.s32.totalorder %s405_s0, %s241_s22  ;;  %s19_s19 = int_to_ptr.vmem [resolvable:$true] %s18_s19 }
   0x3   :  { %p245_p1 = scmp.lt.u32.totalorder %s241_s22, %s405_s0 }
   0x5   :  { %p247_p2 = pnand %p245_p1, %p242_p0 }
   0x7   :  { %250 = shalt.err (!%p247_p2)
}
   0x8   :  { %s251_s27 = scalar_lea.vmem %s19_s19, 16  ;;  %s255_s28 = scalar_lea.vmem %s19_s19, 32 }
   0x9   :  { %p252_p3 = scmp.ne.s32.totalorder %s19_s19, %s251_s27  ;;  %p256_p4 = scmp.lt.s32.totalorder %s19_s19, %s19_s19 }
   0xa   :  { %p257_p5 = scmp.lt.s32.totalorder %s255_s28, %s251_s27 }
   0xc   :  { %p258_p6 = por %p257_p5, %p256_p4 }
   0xe   :  { %p259_p7 = pnand %p258_p6, %p252_p3 }
  0x10   :  { %262 = shalt.err (!%p259_p7)
}
  0x11   :  { %21 = dma.hbm_to_vmem [thread:$0]  %s405_s0, 16, %s19_s19, [#allocation3]  }
  0x12   :  { %285 = dma.done.wait [#allocation3], 16  }
  0x13   :  { %286 = vsyncadd [#allocation3], 4294967280  ;;  %v33_v0 = vld [vmem:[%s409_s4] sm:$0x1]  ;;  %vm44_vm4 = vcmask 1040384   ;;  %v290_v6 = vmov 0  }
  0x14   :  { %v35_v1 = vld [vmem:[#allocation2] sm:$0x1]  ;;  %vm34_vm0 = vcmp.ne.s32.totalorder %v33_v0, 0  ;;  %vm291_vm7 = vmmov 1   ;;  %s292_s15 = smov [#allocation5]  }
  0x15   :  { %v36_v2 = vld [vmem:[%s406_s1] sm:$0x1]  ;;  %vm37_vm1 = vcmp.ne.s32.totalorder %v35_v1, 1  ;;  %s216_s16 = sshll.u32 %s292_s15, 4  ;;  %s217_s16 = int_to_ptr.vmem [resolvable:$true] %s216_s16 }
  0x16   :  { %vm41_vm2 = vcmp.eq.s32.totalorder %v35_v1, %v36_v2  ;;  %vm342_vm3 = vmand %vm37_vm1, %vm34_vm0  ;;  %v110_v4 = vld [vmem:[%s407_s2] sm:$0x1]  ;;  %vm39_vm5 = vcmp.ne.s32.totalorder %v36_v2, 1  ;;  %s263_s17 = scalar_lea.vmem %s217_s16, 16  ;;  %s267_s18 = scalar_lea.vmem %s217_s16, 32 }
  0x17   :  { %vm42_vm6 = vmand %vm342_vm3, %vm41_vm2  ;;  %v111_v5 = vld [vmem:[%s408_s3] sm:$0x1]  ;;  %vm112_vm10 = vcmp.ne.s32.totalorder %v110_v4, 7  ;;  %p264_p8 = scmp.ne.s32.totalorder %s217_s16, %s263_s17  ;;  %p268_p9 = scmp.lt.s32.totalorder %s217_s16, %s217_s16 }
  0x18   :  { %v43_v7 = vsel %vm42_vm6, 1, %v290_v6  ;;  %vm355_vm8 = vmxor %vm41_vm2, %vm291_vm7  ;;  %vm116_vm12 = vcmp.eq.s32.totalorder %v110_v4, %v111_v5  ;;  %vm114_vm1 = vcmp.ne.s32.totalorder %v111_v5, 7  ;;  %p269_p10 = scmp.lt.s32.totalorder %s267_s18, %s263_s17 }
  0x19   :  { %v45_v9 = vsel %vm44_vm4, %v43_v7, 0  ;;  %vm66_vm9 = vmand %vm342_vm3, %vm355_vm8 }
  0x1a   :  { %v47_v10 = vshrl.u32 %v45_v9, 16  ;;  %v46_v11 = vand.u32 65535, %v45_v9  ;;  %v67_v12 = vsel %vm66_vm9, 1, %v290_v6  ;;  %vm40_vm11 = vmand %vm39_vm5, %vm34_vm0  ;;  %p270_p11 = por %p269_p10, %p268_p9 }
  0x1b   :  { %v68_v13 = vsel %vm44_vm4, %v67_v12, 0  ;;  %vm88_vm13 = vmand %vm40_vm11, %vm355_vm8 }
  0x1c   :  { %v49_v14 = vcvt.s32.f32 %v47_v10  ;;  %v48_v15 = vcvt.s32.f32 %v46_v11  ;;  %v70_v16 = vshrl.u32 %v68_v13, 16  ;;  %v69_v17 = vand.u32 65535, %v68_v13  ;;  %vm369_vm14 = vmand %vm112_vm10, %vm34_vm0  ;;  %p271_p12 = pnand %p270_p11, %p264_p8 }
  0x1d   :  { %v89_v19 = vsel %vm88_vm13, 1, %v290_v6  ;;  %vm117_vm15 = vmand %vm369_vm14, %vm116_vm12 }
  0x1e   :  { %52 = vadd.xlane.f32.xlu0 %v49_v14  ;;  %50 = vadd.xlane.f32.xlu1 %v48_v15  ;;  %v72_v20 = vcvt.s32.f32 %v70_v16  ;;  %v71_v21 = vcvt.s32.f32 %v69_v17  ;;  %v90_v22 = vsel %vm44_vm4, %v89_v19, 0  ;;  %v118_v23 = vsel %vm117_vm15, 1, %v290_v6  ;;  %vm379_vm2 = vmxor %vm116_vm12, %vm291_vm7 }
  0x1f   :  { %v92_v25 = vshrl.u32 %v90_v22, 16  ;;  %v91_v26 = vand.u32 65535, %v90_v22  ;;  %v119_v27 = vsel %vm44_vm4, %v118_v23, 0  ;;  %vm140_vm3 = vmand %vm369_vm14, %vm379_vm2 }
  0x20   :  { %v141_v28 = vsel %vm140_vm3, 1, %v290_v6  ;;  %vm115_vm5 = vmand %vm114_vm1, %vm34_vm0  ;;  %v121_v31 = vshrl.u32 %v119_v27, 16  ;;  %v120_v32 = vand.u32 65535, %v119_v27 }
  0x21   :  { %vm162_vm6 = vmand %vm115_vm5, %vm379_vm2  ;;  %v94_v29 = vcvt.s32.f32 %v92_v25  ;;  %v93_v30 = vcvt.s32.f32 %v91_v26  ;;  %v142_v33 = vsel %vm44_vm4, %v141_v28, 0 }
  0x22   :  { %75 = vadd.xlane.f32.xlu0 %v72_v20  ;;  %73 = vadd.xlane.f32.xlu1 %v71_v21  ;;  %v163_v34 = vsel %vm162_vm6, 1, %v290_v6  ;;  %v123_v35 = vcvt.s32.f32 %v121_v31  ;;  %v122_v36 = vcvt.s32.f32 %v120_v32  ;;  %v144_v37 = vshrl.u32 %v142_v33, 16 }
  0x23   :  { %v143_v38 = vand.u32 65535, %v142_v33  ;;  %v164_v39 = vsel %vm44_vm4, %v163_v34, 0 }
  0x24   :  { %v146_v40 = vcvt.s32.f32 %v144_v37  ;;  %v166_v42 = vshrl.u32 %v164_v39, 16  ;;  %v165_v43 = vand.u32 65535, %v164_v39 }
  0x25   :  { %v145_v41 = vcvt.s32.f32 %v143_v38 }
  0x26   :  { %97 = vadd.xlane.f32.xlu0 %v94_v29  ;;  %95 = vadd.xlane.f32.xlu1 %v93_v30  ;;  %v168_v44 = vcvt.s32.f32 %v166_v42  ;;  %v167_v45 = vcvt.s32.f32 %v165_v43 }
  0x2a   :  { %126 = vadd.xlane.f32.xlu0 %v123_v35  ;;  %124 = vadd.xlane.f32.xlu1 %v122_v36 }
  0x2e   :  { %149 = vadd.xlane.f32.xlu0 %v146_v40  ;;  %147 = vadd.xlane.f32.xlu1 %v145_v41 }
  0x32   :  { %171 = vadd.xlane.f32.xlu0 %v168_v44  ;;  %169 = vadd.xlane.f32.xlu1 %v167_v45 }
  0xab   :  { %v53_v46 = vpop.xlane.xlu0 %52  ;;  %v51_v47 = vpop.xlane.xlu1 %50 }
  0xac   :  { %v55_v48 = vcvt.f32.s32 %v53_v46  ;;  %v54_v49 = vcvt.f32.s32 %v51_v47 }
  0xae   :  { %v56_v50 = vshll.u32 %v55_v48, 16 }
  0xaf   :  { %v76_v51 = vpop.xlane.xlu0 %75  ;;  %v74_v52 = vpop.xlane.xlu1 %73 }
  0xb0   :  { %v57_v53 = vadd.s32 %v56_v50, %v54_v49  ;;  %v78_v54 = vcvt.f32.s32 %v76_v51  ;;  %v77_v55 = vcvt.f32.s32 %v74_v52 }
  0xb2   :  { %v58_v56 = vrot.slane %v57_v53, 4  ;;  %v79_v57 = vshll.u32 %v78_v54, 16  ;;  %v184_v54 = vlaneseq }
  0xb3   :  { %v98_v58 = vpop.xlane.xlu0 %97  ;;  %v96_v59 = vpop.xlane.xlu1 %95 }
  0xb4   :  { %v80_v60 = vadd.s32 %v79_v57, %v77_v55  ;;  %v100_v61 = vcvt.f32.s32 %v98_v58  ;;  %v99_v62 = vcvt.f32.s32 %v96_v59  ;;  %v59_v63 = vadd.s32 %v58_v56, %v57_v53 }
  0xb5   :  { %v185_v55 = vand.u32 127, %v184_v54 }
  0xb6   :  { %v81_v0 = vrot.slane %v80_v60, 4  ;;  %v101_v1 = vshll.u32 %v100_v61, 16  ;;  %v60_v2 = vrot.slane %v59_v63, 2 }
  0xb7   :  { %v127_v3 = vpop.xlane.xlu0 %126  ;;  %v125_v4 = vpop.xlane.xlu1 %124  ;;  %vm189_vm0 = vcmp.eq.s32.totalorder %v185_v55, 1  ;;  %vm186_vm4 = vcmp.eq.s32.totalorder %v185_v55, 0  ;;  %vm193_vm7 = vcmp.eq.s32.totalorder %v185_v55, 2  ;;  %vm197_vm8 = vcmp.eq.s32.totalorder %v185_v55, 3 }
  0xb8   :  { %v82_v5 = vadd.s32 %v81_v0, %v80_v60  ;;  %v102_v6 = vadd.s32 %v101_v1, %v99_v62  ;;  %v129_v7 = vcvt.f32.s32 %v127_v3  ;;  %v128_v8 = vcvt.f32.s32 %v125_v4 }
  0xb9   :  { %v61_v9 = vadd.s32 %v60_v2, %v59_v63  ;;  %vm201_vm9 = vcmp.eq.s32.totalorder %v185_v55, 4  ;;  %vm205_vm10 = vcmp.eq.s32.totalorder %v185_v55, 5 }
  0xba   :  { %v103_v10 = vrot.slane %v102_v6, 4  ;;  %v130_v11 = vshll.u32 %v129_v7, 16  ;;  %v83_v12 = vrot.slane %v82_v5, 2 }
  0xbb   :  { %v150_v13 = vpop.xlane.xlu0 %149  ;;  %v148_v14 = vpop.xlane.xlu1 %147  ;;  %v62_v15 = vrot.slane %v61_v9, 1 }
  0xbc   :  { %v104_v16 = vadd.s32 %v103_v10, %v102_v6  ;;  %v131_v17 = vadd.s32 %v130_v11, %v128_v8  ;;  %v152_v18 = vcvt.f32.s32 %v150_v13  ;;  %v151_v19 = vcvt.f32.s32 %v148_v14 }
  0xbd   :  { %v63_v20 = vadd.s32 %v62_v15, %v61_v9  ;;  %v84_v21 = vadd.s32 %v83_v12, %v82_v5 }
  0xbe   :  { %v132_v22 = vrot.slane %v131_v17, 4  ;;  %v153_v23 = vshll.u32 %v152_v18, 16  ;;  %v105_v24 = vrot.slane %v104_v16, 2 }
  0xbf   :  { %225 = vpush %v63_v20  ;;  %v172_v25 = vpop.xlane.xlu0 %171  ;;  %v170_v26 = vpop.xlane.xlu1 %169  ;;  %v85_v27 = vrot.slane %v84_v21, 1 }
  0xc0   :  { %v133_v28 = vadd.s32 %v132_v22, %v131_v17  ;;  %v154_v29 = vadd.s32 %v153_v23, %v151_v19  ;;  %v174_v30 = vcvt.f32.s32 %v172_v25  ;;  %v173_v31 = vcvt.f32.s32 %v170_v26 }
  0xc1   :  { %v86_v32 = vadd.s32 %v85_v27, %v84_v21  ;;  %v106_v33 = vadd.s32 %v105_v24, %v104_v16 }
  0xc2   :  { %v155_v34 = vrot.slane %v154_v29, 4  ;;  %v175_v35 = vshll.u32 %v174_v30, 16  ;;  %v134_v36 = vrot.slane %v133_v28, 2 }
  0xc3   :  { %227 = vpush %v86_v32  ;;  %v107_v37 = vrot.slane %v106_v33, 1 }
  0xc4   :  { %v156_v38 = vadd.s32 %v155_v34, %v154_v29  ;;  %v176_v39 = vadd.s32 %v175_v35, %v173_v31  ;;  %v135_v40 = vadd.s32 %v134_v36, %v133_v28 }
  0xc5   :  { %v108_v41 = vadd.s32 %v107_v37, %v106_v33 }
  0xc6   :  { %v177_v42 = vrot.slane %v176_v39, 4  ;;  %v136_v43 = vrot.slane %v135_v40, 1  ;;  %v157_v44 = vrot.slane %v156_v38, 2 }
  0xc7   :  { %229 = vpush %v108_v41 }
  0xc8   :  { %v178_v45 = vadd.s32 %v177_v42, %v176_v39  ;;  %v137_v46 = vadd.s32 %v136_v43, %v135_v40  ;;  %v158_v47 = vadd.s32 %v157_v44, %v156_v38 }
  0xca   :  { %231 = vpush %v137_v46  ;;  %v159_v48 = vrot.slane %v158_v47, 1  ;;  %v179_v49 = vrot.slane %v178_v45, 2 }
  0xcc   :  { %v160_v50 = vadd.s32 %v159_v48, %v158_v47  ;;  %v180_v51 = vadd.s32 %v179_v49, %v178_v45 }
  0xce   :  { %233 = vpush %v160_v50  ;;  %v181_v52 = vrot.slane %v180_v51, 1 }
  0xd0   :  { %v182_v53 = vadd.s32 %v181_v52, %v180_v51 }
  0xd2   :  { %235 = vpush %v182_v53 }
  0xf0   :  { %s226_s1 = spop %225 }
  0xf1   :  { %v187_v57 = vstv %s226_s1 }
  0xf2   :  { %v188_v61 = vsel %vm186_vm4, %v187_v57, 0 }
  0xf4   :  { %s228_s2 = spop %227 }
  0xf5   :  { %v190_v56 = vstv %s228_s2 }
  0xf6   :  { %v191_v59 = vsel %vm189_vm0, %v190_v56, 0 }
  0xf7   :  { %v192_v63 = vadd.s32 %v191_v59, %v188_v61 }
  0xf8   :  { %s230_s3 = spop %229 }
  0xf9   :  { %v194_v58 = vstv %s230_s3 }
  0xfa   :  { %v195_v62 = vsel %vm193_vm7, %v194_v58, 0 }
  0xfb   :  { %s232_s12 = spop %231  ;;  %v196_v1 = vadd.s32 %v195_v62, %v192_v63 }
  0xfc   :  { %v198_v60 = vstv %s232_s12 }
  0xfd   :  { %v199_v0 = vsel %vm197_vm8, %v198_v60, 0 }
  0xfe   :  { %v200_v4 = vadd.s32 %v199_v0, %v196_v1 }
  0xff   :  { %s234_s13 = spop %233 }
 0x100   :  { %v202_v2 = vstv %s234_s13 }
 0x101   :  { %v203_v3 = vsel %vm201_vm9, %v202_v2, 0 }
 0x102   :  { %v204_v5 = vadd.s32 %v203_v3, %v200_v4 }
 0x103   :  { %s236_s14 = spop %235 }
 0x104   :  { %v206_v6 = vstv %s236_s14 }
 0x105   :  { %v207_v7 = vsel %vm205_vm10, %v206_v6, 0 }
 0x106   :  { %v208_v8 = vadd.s32 %v207_v7, %v204_v5 }
 0x108   :  { %209 = vst [vmem:[#allocation5] sm:$0x1] %v208_v8 }
 0x109   :  { %274 = shalt.err (!%p271_p12)
}
 0x10a   :  { %s275_s21 = scalar_lea.hbm %s410_s5, 16 }
 0x10b   :  { %p276_p13 = scmp.ne.s32.totalorder %s410_s5, %s275_s21  ;;  %p279_p0 = scmp.lt.u32.totalorder %s275_s21, %s410_s5 }
 0x10d   :  { %p281_p1 = pnand %p279_p0, %p276_p13 }
 0x10f   :  { %284 = shalt.err (!%p281_p1)
}
 0x110   :  { %219 = dma.vmem_to_hbm [thread:$0]  %s217_s16, 16, %s410_s5, [#allocation4]  }
 0x111   :  { %287 = dma.done.wait [#allocation4], 16  }
 0x112   :  { %288 = vsyncadd [#allocation4], 4294967280 }
 0x113   :  { %223 = vsyncpa [#allocation3], 1 }
 0x114   :  { %224 = vsyncpa [#allocation4], 1 }

</bundles_post_ra>
